<compile_context>
chip_gen: v6e
topology: v6e:2x2x1
jax: 0.10.0
libtpu: 0.0.40
codegen_flags: <defaults>
</compile_context>

<pallas_src>
import functools

import jax
import jax.numpy as jnp
from jax.experimental import pallas as pl
from jax.experimental.pallas import tpu as pltpu

_LANES = 128
_MAX_TILE_ROWS = 8192            # 8192 x 128 x 4 B = 4 MiB f32 per input block
_VMEM_LIMIT = 32 * 1024 * 1024   # safe on v5e/v6e (128 MiB) and v7x (64 MiB/TC)


def _choose_tiling(rows):
    """Pick (tile_r, blocks, ncores, bpc) with ncores * bpc == blocks exactly."""
    tile_r = rows if rows <= _MAX_TILE_ROWS else _MAX_TILE_ROWS
    blocks = -(-rows // tile_r)
    if blocks > 1 and blocks % 2 == 1:
        # Nudge the tile so the block count becomes even: the 2-way core split
        # then never needs a clamped duplicate block.  Multiples of 32 keep
        # int8 / bf16 operands natively tileable.
        alt = -(-rows // (blocks + 1))
        alt = ((alt + 31) // 32) * 32
        alt_blocks = -(-rows // alt)
        if 32 <= alt <= _MAX_TILE_ROWS and alt_blocks % 2 == 0:
            tile_r, blocks = alt, alt_blocks
    ncores = 2 if (blocks >= 2 and blocks % 2 == 0) else 1
    bpc = blocks // ncores
    return tile_r, blocks, ncores, bpc


def _reduce_tile(x):
    """(tile_r, cols) f32 -> (min(tile_r, 8), cols) partial sums.

    Splits the sublane stacks into up to 8 independent accumulation chains so
    the per-tile reduction is VALU-throughput bound rather than bound by the
    latency of one serial add chain.
    """
    tile_r, cols = x.shape
    if tile_r <= 8:
        return x
    n = tile_r // 8                       # whole (8, cols) sublane stacks
    n8 = n * 8
    y = x[:n8].reshape(n, 8, cols)
    nchains = min(8, n)
    chunk = n // nchains
    parts = [y[c * chunk:(c + 1) * chunk].sum(axis=0) for c in range(nchains)]
    if nchains * chunk < n:
        parts.append(y[nchains * chunk:].sum(axis=0))
    out = parts[0]
    for p in parts[1:]:
        out = out + p
    if n8 < tile_r:
        # <8 leftover rows (only when the tile is the whole array and
        # rows % 8 != 0): fold their column sums into sublane 0.
        rest = x[n8:].sum(axis=0, keepdims=True)                  # (1, cols)
        sub = jax.lax.broadcasted_iota(jnp.int32, (8, cols), 0)
        out = out + jnp.where(sub == 0, jnp.broadcast_to(rest, (8, cols)), 0.0)
    return out


def _sq_sum_kernel(item_ref, out_ref, acc_ref, *, bpc, tail_blk, tail_rows):
    """Unmasked path: accumulate sum(item^2); sum(mask)==numel host-side."""
    i = pl.program_id(1)

    @pl.when(i == 0)
    def _():
        acc_ref[...] = jnp.zeros_like(acc_ref)

    x = item_ref[...].astype(jnp.float32)
    sq = x * x
    tile_r, cols = sq.shape

    if tail_rows:
        # Exactly one partial block exists; only it pays the validity select.
        is_tail = (pl.program_id(0) * bpc + i) == tail_blk

        @pl.when(is_tail)
        def _():
            rid = jax.lax.broadcasted_iota(jnp.int32, (tile_r, cols), 0)
            # jnp.where picks 0 even if the fetched-garbage rows square to
            # inf/nan.
            acc_ref[...] += _reduce_tile(jnp.where(rid < tail_rows, sq, 0.0))

        @pl.when(jnp.logical_not(is_tail))
        def _():
            acc_ref[...] += _reduce_tile(sq)
    else:
        acc_ref[...] += _reduce_tile(sq)

    @pl.when(i == pl.num_programs(1) - 1)
    def _():
        out_ref[...] = acc_ref[...][None]


def _masked_sq_sum_kernel(item_ref, mask_ref, out_sq_ref, out_ms_ref,
                          acc_sq_ref, acc_ms_ref, *, bpc, tail_blk, tail_rows):
    """Masked path: accumulate sum(item^2 * mask) and sum(mask)."""
    i = pl.program_id(1)

    @pl.when(i == 0)
    def _():
        acc_sq_ref[...] = jnp.zeros_like(acc_sq_ref)
        acc_ms_ref[...] = jnp.zeros_like(acc_ms_ref)

    x = item_ref[...].astype(jnp.float32)
    m = mask_ref[...].astype(jnp.float32)
    sq = x * x * m
    tile_r, cols = sq.shape

    def _accumulate(sq_t, m_t):
        acc_sq_ref[...] += _reduce_tile(sq_t)
        acc_ms_ref[...] += _reduce_tile(m_t)

    if tail_rows:
        is_tail = (pl.program_id(0) * bpc + i) == tail_blk

        @pl.when(is_tail)
        def _():
            rid = jax.lax.broadcasted_iota(jnp.int32, (tile_r, cols), 0)
            valid = rid < tail_rows
            _accumulate(jnp.where(valid, sq, 0.0), jnp.where(valid, m, 0.0))

        @pl.when(jnp.logical_not(is_tail))
        def _():
            _accumulate(sq, m)
    else:
        _accumulate(sq, m)

    @pl.when(i == pl.num_programs(1) - 1)
    def _():
        out_sq_ref[...] = acc_sq_ref[...][None]
        out_ms_ref[...] = acc_ms_ref[...][None]


def _l2_partial_sums(item2d, mask2d):
    """Pallas reduction over a 2-D view.

    Returns (sum(item^2 * mask), sum(mask)); the second is None when
    mask2d is None.
    """
    rows, cols = item2d.shape
    tile_r, _, ncores, bpc = _choose_tiling(rows)
    acc_r = tile_r if tile_r <= 8 else 8
    tail_rows = rows % tile_r            # 0 -> no partial block
    tail_blk = rows // tile_r            # global index of the partial block

    in_spec = pl.BlockSpec((tile_r, cols), lambda c, i: (c * bpc + i, 0))
    out_spec = pl.BlockSpec((1, acc_r, cols), lambda c, i: (c, 0, 0))
    out_struct = jax.ShapeDtypeStruct((ncores, acc_r, cols), jnp.float32)
    cparams = pltpu.CompilerParams(
        dimension_semantics=("parallel", "arbitrary"),
        vmem_limit_bytes=_VMEM_LIMIT)

    if mask2d is None:
        kern = functools.partial(_sq_sum_kernel, bpc=bpc,
                                 tail_blk=tail_blk, tail_rows=tail_rows)
        out_sq = pl.pallas_call(
            kern,
            out_shape=out_struct,
            grid_spec=pltpu.PrefetchScalarGridSpec(
                num_scalar_prefetch=0,
                grid=(ncores, bpc),
                in_specs=[in_spec],
                out_specs=out_spec,
                scratch_shapes=[pltpu.VMEM((acc_r, cols), jnp.float32)]),
            compiler_params=cparams,
        )(item2d)
        return jnp.sum(out_sq), None

    kern = functools.partial(_masked_sq_sum_kernel, bpc=bpc,
                             tail_blk=tail_blk, tail_rows=tail_rows)
    out_sq, out_ms = pl.pallas_call(
        kern,
        out_shape=(out_struct, out_struct),
        grid_spec=pltpu.PrefetchScalarGridSpec(
            num_scalar_prefetch=0,
            grid=(ncores, bpc),
            in_specs=[in_spec,
                      pl.BlockSpec((tile_r, cols), lambda c, i: (c * bpc + i, 0))],
            out_specs=(out_spec,
                       pl.BlockSpec((1, acc_r, cols), lambda c, i: (c, 0, 0))),
            scratch_shapes=[pltpu.VMEM((acc_r, cols), jnp.float32),
                            pltpu.VMEM((acc_r, cols), jnp.float32)]),
        compiler_params=cparams,
    )(item2d, mask2d)
    return jnp.sum(out_sq), jnp.sum(out_ms)


@functools.partial(jax.jit, static_argnames=("divide_nitems",))
def l2_loss(item, mask=None, divide_nitems=False):
    """JAX/Pallas re-implementation of MODEL/utls/metrics.py::L2_Loss.forward."""
    item = jnp.asarray(item)
    if item.ndim <= 3:
        item = item[..., None]           # torch unsqueeze(-1)

    if mask is not None:
        mask = jnp.asarray(mask)
        if mask.ndim <= 3:
            mask = mask[..., None]
        if jnp.issubdtype(mask.dtype, jnp.bool_):
            # i1 refs are awkward for Mosaic loads; a cheap 2-byte widening
            # keeps mask HBM traffic at half of f32.  Other dtypes (int8,
            # bf16, f32, ...) stream natively and are upcast in-kernel.
            mask = mask.astype(jnp.bfloat16)
        if mask.shape != item.shape:
            # TODO(synk): broadcasting materializes a full-size mask copy;
            # same-shape masks stream zero-copy in their native dtype.
            mask = jnp.broadcast_to(mask, item.shape)

    numel = item.size

    # Free bitcast 2-D views of the contiguous buffer (no host pad/copy).
    if numel % _LANES == 0:
        view = (numel // _LANES, _LANES)
    else:
        view = (numel // item.shape[-1], item.shape[-1])
    item2d = item.reshape(view)

    if mask is None:
        sq, _ = _l2_partial_sums(item2d, None)
        msum = jnp.float32(numel)        # sum of the implicit all-ones mask
    else:
        sq, msum = _l2_partial_sums(item2d, mask.reshape(view))

    if divide_nitems:
        # torch: n_items = 1.0 if mask.sum() < 1 else mask.sum()
        n_items = jnp.where(msum < 1.0, jnp.float32(1.0), msum)
        return sq / n_items
    # torch: (item^2 * mask).mean()
    return sq / numel


if __name__ == "__main__":
    key = jax.random.PRNGKey(0)
    k1, k2 = jax.random.split(key)

    # Small NCHW input consistent with the module's (B, C, H, W) usage.
    x = jax.random.normal(k1, (2, 4, 16, 16), dtype=jnp.float32)
    mask = (jax.random.uniform(k2, (2, 4, 16, 16)) > 0.5).astype(jnp.float32)

    # default path (mean of item^2), mask elided
    loss0 = l2_loss(x)
    jax.block_until_ready(loss0)
    assert jnp.allclose(loss0, jnp.mean(x * x), rtol=1e-5, atol=1e-6)

    # masked path
    loss1 = l2_loss(x, mask)
    jax.block_until_ready(loss1)
    assert jnp.allclose(loss1, jnp.mean(x * x * mask), rtol=1e-5, atol=1e-6)

    # divide_nitems path
    loss2 = l2_loss(x, mask, divide_nitems=True)
    jax.block_until_ready(loss2)
    ref2 = jnp.sum(x * x * mask) / jnp.maximum(jnp.sum(mask), 1.0)
    assert jnp.allclose(loss2, ref2, rtol=1e-5, atol=1e-6)

    # 3-D input path (unsqueeze(-1) branch)
    x3 = jax.random.normal(k1, (2, 4, 16), dtype=jnp.float32)
    loss3 = l2_loss(x3)
    jax.block_until_ready(loss3)
    assert jnp.allclose(loss3, jnp.mean(x3 * x3), rtol=1e-5, atol=1e-6)

    # numel not a multiple of 128: zero-copy (R, last_dim) view (no host pad)
    xo = jax.random.normal(k2, (2, 3, 7, 5), dtype=jnp.float32)
    losso = l2_loss(xo)
    jax.block_until_ready(losso)
    assert jnp.allclose(losso, jnp.mean(xo * xo), rtol=1e-5, atol=1e-6)

    # Single-block larger input: exercises the in-tile multi-chain reduction
    # with a leftover chain and the small (8,128) accumulator.
    xb = jax.random.normal(k1, (2, 8, 184, 184), dtype=jnp.float32)
    mb = (jax.random.uniform(k2, (2, 8, 184, 184)) > 0.3).astype(jnp.float32)
    lb0 = l2_loss(xb)
    jax.block_until_ready(lb0)
    assert jnp.allclose(lb0, jnp.mean(xb * xb), rtol=1e-4, atol=1e-6)
    lb1 = l2_loss(xb, mb, divide_nitems=True)
    jax.block_until_ready(lb1)
    refb1 = jnp.sum(xb * xb * mb) / jnp.maximum(jnp.sum(mb), 1.0)
    assert jnp.allclose(lb1, refb1, rtol=1e-4, atol=1e-6)

    # Multi-block input: exercises the even-block tile adjustment, the 2-way
    # "parallel" core split, per-core multi-step accumulation (bpc >= 2), the
    # pl.when-gated partial tail block, and a narrow-dtype (bool->bf16) mask.
    xm = jax.random.normal(k2, (19976, 128), dtype=jnp.float32)
    mm = jax.random.uniform(k1, (19976, 128)) > 0.4       # bool mask
    lm0 = l2_loss(xm)
    jax.block_until_ready(lm0)
    assert jnp.allclose(lm0, jnp.mean(xm * xm), rtol=1e-4, atol=1e-6)
    lm1 = l2_loss(xm, mm, divide_nitems=True)
    jax.block_until_ready(lm1)
    mmf = mm.astype(jnp.float32)
    refm1 = jnp.sum(xm * xm * mmf) / jnp.maximum(jnp.sum(mmf), 1.0)
    assert jnp.allclose(lm1, refm1, rtol=1e-4, atol=1e-6)

    print("KERNEL_OK")
</pallas_src>

<mosaic_0001>
module attributes {stable_mosaic.version = 11 : i64} {
  func.func @_sq_sum_kernel(%arg0: i32, %arg1: i32, %arg2: memref<16x128xf32, #tpu.memory_space<vmem>>, %arg3: memref<1x8x128xf32, #tpu.memory_space<vmem>>, %arg4: memref<8x128xf32, #tpu.memory_space<vmem>>) attributes {dimension_semantics = [#tpu.dimension_semantics<parallel>, #tpu.dimension_semantics<arbitrary>], iteration_bounds = array<i64: 1, 1>, scalar_prefetch = 0 : i64, scratch_operands = 1 : i64, tpu.core_type = #tpu.core_type<tc>, window_params = [{transform_indices = @transform_0, window_bounds = array<i64: 16, 128>}, {transform_indices = @transform_1, window_bounds = array<i64: 1, 8, 128>}]} {
    %c0_i32 = arith.constant 0 : i32
    %0 = arith.cmpi eq, %arg1, %c0_i32 : i32
    %1 = arith.extui %0 : i1 to i32
    %c0_i32_0 = arith.constant 0 : i32
    %2 = arith.cmpi ne, %1, %c0_i32_0 : i32
    scf.if %2 {
      %cst_9 = arith.constant 0.000000e+00 : f32
      %17 = vector.broadcast %cst_9 : f32 to vector<8x128xf32>
      %c0_10 = arith.constant 0 : index
      %c0_11 = arith.constant 0 : index
      %18 = vector.load %arg4[%c0_10, %c0_11] : memref<8x128xf32, #tpu.memory_space<vmem>>, vector<8x128xf32>
      tpu.vector_store %arg4[%c0_10, %c0_11], %17 {strides = array<i32>} : memref<8x128xf32, #tpu.memory_space<vmem>>, vector<8x128xf32>,
    } else {
    }
    %c0 = arith.constant 0 : index
    %c0_1 = arith.constant 0 : index
    %3 = vector.load %arg2[%c0, %c0_1] : memref<16x128xf32, #tpu.memory_space<vmem>>, vector<16x128xf32>
    %4 = arith.mulf %3, %3 : vector<16x128xf32>
    %c0_2 = arith.constant 0 : index
    %c0_3 = arith.constant 0 : index
    %5 = vector.load %arg4[%c0_2, %c0_3] : memref<8x128xf32, #tpu.memory_space<vmem>>, vector<8x128xf32>
    %6 = vector.shape_cast %4 : vector<16x128xf32> to vector<2x8x128xf32>
    %7 = vector.extract_strided_slice %6 {offsets = [0, 0, 0], sizes = [1, 8, 128], strides = [1, 1, 1]} : vector<2x8x128xf32> to vector<1x8x128xf32>
    %cst = arith.constant dense<0.000000e+00> : vector<8x128xf32>
    %8 = vector.multi_reduction <add>, %7, %cst [0] : vector<1x8x128xf32> to vector<8x128xf32>
    %9 = vector.extract_strided_slice %6 {offsets = [1, 0, 0], sizes = [1, 8, 128], strides = [1, 1, 1]} : vector<2x8x128xf32> to vector<1x8x128xf32>
    %cst_4 = arith.constant dense<0.000000e+00> : vector<8x128xf32>
    %10 = vector.multi_reduction <add>, %9, %cst_4 [0] : vector<1x8x128xf32> to vector<8x128xf32>
    %11 = arith.addf %8, %10 : vector<8x128xf32>
    %12 = arith.addf %5, %11 : vector<8x128xf32>
    %c0_5 = arith.constant 0 : index
    %c0_6 = arith.constant 0 : index
    %13 = vector.load %arg4[%c0_5, %c0_6] : memref<8x128xf32, #tpu.memory_space<vmem>>, vector<8x128xf32>
    tpu.vector_store %arg4[%c0_5, %c0_6], %12 {strides = array<i32>} : memref<8x128xf32, #tpu.memory_space<vmem>>, vector<8x128xf32>,
    %c0_i32_7 = arith.constant 0 : i32
    %14 = arith.cmpi eq, %arg1, %c0_i32_7 : i32
    %15 = arith.extui %14 : i1 to i32
    %c0_i32_8 = arith.constant 0 : i32
    %16 = arith.cmpi ne, %15, %c0_i32_8 : i32
    scf.if %16 {
      %c0_9 = arith.constant 0 : index
      %c0_10 = arith.constant 0 : index
      %17 = vector.load %arg4[%c0_9, %c0_10] : memref<8x128xf32, #tpu.memory_space<vmem>>, vector<8x128xf32>
      %18 = vector.shape_cast %17 : vector<8x128xf32> to vector<1x8x128xf32>
      %c0_11 = arith.constant 0 : index
      %c0_12 = arith.constant 0 : index
      %c0_13 = arith.constant 0 : index
      %19 = vector.load %arg3[%c0_11, %c0_12, %c0_13] : memref<1x8x128xf32, #tpu.memory_space<vmem>>, vector<1x8x128xf32>
      tpu.vector_store %arg3[%c0_11, %c0_12, %c0_13], %18 {strides = array<i32>} : memref<1x8x128xf32, #tpu.memory_space<vmem>>, vector<1x8x128xf32>,
    } else {
    }
    return
  }
  func.func @transform_0(%arg0: i32, %arg1: i32) -> (i32, i32) {
    %c1_i32 = arith.constant 1 : i32
    %0 = arith.muli %arg0, %c1_i32 : i32
    %1 = arith.addi %0, %arg1 : i32
    %c0_i32 = arith.constant 0 : i32
    %c0_i32_0 = arith.constant 0 : i32
    return %1, %c0_i32 : i32, i32
  }
  func.func @transform_1(%arg0: i32, %arg1: i32) -> (i32, i32, i32) {
    %c0_i32 = arith.constant 0 : i32
    %c0_i32_0 = arith.constant 0 : i32
    %c0_i32_1 = arith.constant 0 : i32
    return %arg0, %c0_i32, %c0_i32_0 : i32, i32, i32
  }
}

</mosaic_0001>

<bundles_post_ra>
// kernel: l2_loss.1
= control target key start
LH: loop header
LB: loop body
LE: loop exit
PB: predicated region body
PF: predicated region fallthrough
CT: control target
= control target key end

     0   :  { %s79_s0 = inlined_call_operand.vmem [shape: f32[16,128], index: 0, kind: input, shape index: {}]   ;;  %s80_s1 = inlined_call_operand.vmem [shape: f32[1,8,128], index: 1, kind: output, shape index: {}]  }
   0x1   :  { %v35_v0 = vld [vmem:[%s79_s0] sm:$0xff]  ;;  %v36_v1 = vld [vmem:[%s79_s0 + $0x8] sm:$0xff] }
   0x2   :  { %v37_v2 = vmul.f32 %v35_v0, %v35_v0  ;;  %v38_v3 = vmul.f32 %v36_v1, %v36_v1 }
   0x4   :  { %v42_v4 = vadd.f32 %v38_v3, %v37_v2 }
   0x6   :  { %49 = vst [vmem:[%s80_s1] sm:$0xff] %v42_v4 }

</bundles_post_ra>
